<compile_context>
chip_gen: v7x
topology: tpu7x:2x2x1
jax: 0.10.0
libtpu: 0.0.40
codegen_flags: <defaults>
</compile_context>

<pallas_src>
import numpy as np
import jax
import jax.numpy as jnp
from jax.experimental import pallas as pl
from jax.experimental.pallas import tpu as pltpu


_NEG_SLOPE = 0.01  # nn.LeakyReLU default


def _ceil_div(a, b):
    return -(-a // b)


def _adaptive_pool_matrix(out_size, in_size):
    """A[p, h]: averaging weights so A @ v == AdaptiveAvgPool1d(v, out_size)."""
    A = np.zeros((out_size, in_size), np.float64)
    for p in range(out_size):
        s = (p * in_size) // out_size
        e = _ceil_div((p + 1) * in_size, out_size)
        A[p, s:e] = 1.0 / (e - s)
    return A


def _upsample_matrix(out_size, in_size):
    """U[i, p]: 1-D bilinear interpolation weights with align_corners=True."""
    U = np.zeros((out_size, in_size), np.float64)
    if in_size == 1 or out_size == 1:
        U[:, 0] = 1.0
        return U
    scale = (in_size - 1) / (out_size - 1)
    for i in range(out_size):
        src = i * scale
        p0 = min(int(np.floor(src)), in_size - 1)
        p1 = min(p0 + 1, in_size - 1)
        t = src - p0
        U[i, p0] += 1.0 - t
        U[i, p1] += t
    return U


def _pick_spatial_tile(hw_pad, lane_bytes_per_tm, tile_budget_bytes, min_tiles):
    """Largest 128-multiple divisor of hw_pad whose double-buffered x/out tiles
    fit the budget and that yields at least `min_tiles` grid steps."""
    cap = max(128, (tile_budget_bytes // max(lane_bytes_per_tm, 1)) // 128 * 128)
    best, m = 128, 128
    while m <= hw_pad:
        if hw_pad % m == 0 and m <= cap and hw_pad // m >= min_tiles:
            best = m
        m += 128
    return best


def _ppm_kernel(x_ref, y_ref, m_ref, o_ref):
    # x_ref: (1, C_in, tm)      pass-through input tile, NC(HW) layout
    # y_ref: (1, C_br, S_pad)   block-diagonal pooled/conv/LeakyReLU features (this batch)
    # m_ref: (S_pad, HW_pad)    fused bilinear-upsample matrix, VMEM-resident
    # o_ref: (1, C_out, tm)
    c_in = x_ref.shape[1]
    tm = o_ref.shape[2]
    # Pass-through channels: direct store, no dtype round-trip, no concat slab.
    o_ref[0, :c_in, :] = x_ref[0]
    # All bins' upsample in one MXU matmul against the resident Mt lane-window.
    j = pl.multiple_of(pl.program_id(1) * tm, 128)
    mt = m_ref[:, pl.ds(j, tm)]
    up = jnp.dot(y_ref[0], mt, preferred_element_type=jnp.float32)   # (C_br, tm)
    o_ref[0, c_in:, :] = up.astype(o_ref.dtype)


def ppm_pallas(x, conv_weights, bins, *, negative_slope=_NEG_SLOPE,
               vmem_budget_bytes=40 << 20):
    """x: (B, C_in, H, W); conv_weights[k]: (C_red, C_in) for bin k.
    Returns (B, C_in + len(bins)*C_red, H, W), matching PPM.forward."""
    B, C_in, H, W = x.shape
    HW = H * W
    C_red = conv_weights[0].shape[0]
    C_br = len(bins) * C_red
    C_out = C_in + C_br
    hp = jax.lax.Precision.HIGHEST
    itemsize = jnp.dtype(x.dtype).itemsize

    # ---- static matrices (numpy; depend only on H, W, bins) ----
    S = sum(bn * bn for bn in bins)
    S_pad = _ceil_div(S, 8) * 8                      # sublane-friendly zero padding
    HW_pad = _ceil_div(HW, 128) * 128                # lane-friendly zero padding
    Mt = np.zeros((S_pad, HW_pad), np.float64)
    Ah_rows, pool_w, offs, row_offs = [], [], [], []
    off = row_off = 0
    for bn in bins:
        Ah = _adaptive_pool_matrix(bn, H)
        Aw = _adaptive_pool_matrix(bn, W)
        Ah_rows.append(Ah)
        pool_w.append(jnp.asarray(Aw, jnp.float32))
        Uh = _upsample_matrix(H, bn)
        Uw = _upsample_matrix(W, bn)
        # Mt[off + p*bn + q, i*W + j] = Uh[i, p] * Uw[j, q]
        Mt[off:off + bn * bn, :HW] = np.einsum("ip,jq->pqij", Uh, Uw).reshape(bn * bn, HW)
        offs.append(off)
        row_offs.append(row_off)
        off += bn * bn
        row_off += bn
    Mt = jnp.asarray(Mt, jnp.float32)
    Ah_all = jnp.asarray(np.concatenate(Ah_rows, axis=0), jnp.float32)   # (sum bn, H)

    # ---- single-pass pooling over H for ALL bins (x read once here), then tiny
    # per-bin column-pool + 1x1 conv + LeakyReLU, packed block-diagonally. ----
    # TODO(synk): these operate on <= S (~50) spatial positions, so they stay in
    # plain JAX; fusing them into the kernel would need a cross-tile reduction
    # over x for negligible gain.
    xf = x.astype(jnp.float32)
    tmp_all = jnp.einsum("ph,bchw->bcpw", Ah_all, xf, precision=hp)      # (B, C, sum bn, W)

    y_bd = jnp.zeros((B, C_br, S_pad), jnp.float32)
    for k, (bn, w) in enumerate(zip(bins, conv_weights)):
        tmp = tmp_all[:, :, row_offs[k]:row_offs[k] + bn, :]
        pooled = jnp.einsum("qw,bcpw->bcpq", pool_w[k], tmp, precision=hp)   # AdaptiveAvgPool2d
        yk = jnp.einsum("dc,bcpq->bdpq", w.astype(jnp.float32), pooled,      # 1x1 conv, no bias
                        precision=hp)
        yk = jnp.where(yk >= 0, yk, negative_slope * yk)                     # LeakyReLU
        y_bd = y_bd.at[:, k * C_red:(k + 1) * C_red,
                       offs[k]:offs[k] + bn * bn].set(yk.reshape(B, C_red, bn * bn))

    # ---- flatten + pad spatial so every tile is lane-dense ----
    x_flat = x.reshape(B, C_in, HW)
    if HW_pad != HW:
        x_flat = jnp.pad(x_flat, ((0, 0), (0, 0), (0, HW_pad - HW)))

    # ---- VMEM- and channel-aware spatial tile selection ----
    resident_bytes = 2 * (S_pad * HW_pad * 4 + C_br * S_pad * 4)  # Mt + y (double-buffered)
    lane_bytes_per_tm = 2 * (C_in + C_out) * itemsize             # double-buffered x + out
    min_tiles = 2 if (B == 1 and HW_pad >= 256) else 1            # keep both v7x TCs busy
    tm = _pick_spatial_tile(HW_pad, lane_bytes_per_tm,
                            max(vmem_budget_bytes - resident_bytes, 1 << 20),
                            min_tiles)
    vmem_limit = int(min(48 << 20,
                         max(32 << 20,
                             resident_bytes + lane_bytes_per_tm * tm + (4 << 20))))

    out = pl.pallas_call(
        _ppm_kernel,
        out_shape=jax.ShapeDtypeStruct((B, C_out, HW_pad), x.dtype),
        grid_spec=pltpu.PrefetchScalarGridSpec(
            num_scalar_prefetch=0,
            grid=(B, HW_pad // tm),
            in_specs=[
                pl.BlockSpec((1, C_in, tm), lambda b, i: (b, 0, i)),
                pl.BlockSpec((1, C_br, S_pad), lambda b, i: (b, 0, 0)),
                pl.BlockSpec((S_pad, HW_pad), lambda b, i: (0, 0)),   # VMEM-resident Mt
            ],
            out_specs=pl.BlockSpec((1, C_out, tm), lambda b, i: (b, 0, i)),
        ),
        compiler_params=pltpu.CompilerParams(
            dimension_semantics=("parallel", "parallel"),
            vmem_limit_bytes=vmem_limit),
    )(x_flat, y_bd, Mt)

    if HW_pad != HW:
        out = out[:, :, :HW]
    return out.reshape(B, C_out, H, W)


# ------------------------- pure-JAX reference (PyTorch semantics) -------------------------

def _bilinear_up_ref(y, H, W):
    """F.interpolate(y, (H, W), mode='bilinear', align_corners=True)."""
    B, C, bh, bw = y.shape
    if bh == 1:
        r = jnp.broadcast_to(y, (B, C, H, bw))
    else:
        src = jnp.arange(H, dtype=jnp.float32) * ((bh - 1) / (H - 1))
        p0 = jnp.clip(jnp.floor(src), 0, bh - 1).astype(jnp.int32)
        p1 = jnp.clip(p0 + 1, 0, bh - 1)
        t = jnp.clip(src - p0.astype(jnp.float32), 0.0, 1.0)[None, None, :, None]
        r = (1.0 - t) * y[:, :, p0, :] + t * y[:, :, p1, :]
    if bw == 1:
        out = jnp.broadcast_to(r[:, :, :, :1], (B, C, H, W))
    else:
        src = jnp.arange(W, dtype=jnp.float32) * ((bw - 1) / (W - 1))
        q0 = jnp.clip(jnp.floor(src), 0, bw - 1).astype(jnp.int32)
        q1 = jnp.clip(q0 + 1, 0, bw - 1)
        t = jnp.clip(src - q0.astype(jnp.float32), 0.0, 1.0)[None, None, None, :]
        out = (1.0 - t) * r[:, :, :, q0] + t * r[:, :, :, q1]
    return out


def _reference(x, conv_weights, bins, negative_slope=_NEG_SLOPE):
    B, C, H, W = x.shape
    outs = [x]
    for bn, w in zip(bins, conv_weights):
        rows = []
        for p in range(bn):
            h0 = (p * H) // bn
            h1 = _ceil_div((p + 1) * H, bn)
            cols = []
            for q in range(bn):
                w0 = (q * W) // bn
                w1 = _ceil_div((q + 1) * W, bn)
                cols.append(jnp.mean(x[:, :, h0:h1, w0:w1], axis=(2, 3)))
            rows.append(jnp.stack(cols, axis=-1))
        pooled = jnp.stack(rows, axis=-2)                                  # (B, C, bn, bn)
        y = jnp.einsum("dc,bcpq->bdpq", w, pooled,
                       precision=jax.lax.Precision.HIGHEST)
        y = jnp.where(y >= 0, y, negative_slope * y)
        outs.append(_bilinear_up_ref(y, H, W))
    return jnp.concatenate(outs, axis=1)


if __name__ == "__main__":
    # Small PPM: in_dim=64, reduction_dim=16, bins=(1,2,3,6) (classic PSPNet bins,
    # exercising the non-divisible adaptive-pool windows), spatial 16x16, batch 2.
    B, C_in, H, W = 2, 64, 16, 16
    bins = (1, 2, 3, 6)
    C_red = 16

    key = jax.random.PRNGKey(0)
    keys = jax.random.split(key, 1 + len(bins))
    x = jax.random.normal(keys[0], (B, C_in, H, W), dtype=jnp.float32)
    conv_ws = [0.1 * jax.random.normal(k, (C_red, C_in), dtype=jnp.float32)
               for k in keys[1:]]

    out = ppm_pallas(x, conv_ws, bins)
    out = jax.block_until_ready(out)

    ref = _reference(x, conv_ws, bins)
    assert out.shape == (B, C_in + len(bins) * C_red, H, W), out.shape
    max_err = float(jnp.max(jnp.abs(out - ref)))
    assert jnp.allclose(out, ref, atol=1e-3, rtol=1e-3), max_err

    print("KERNEL_OK")
</pallas_src>

<mosaic_0001>
module attributes {stable_mosaic.version = 11 : i64} {
  func.func @_ppm_kernel(%arg0: i32, %arg1: i32, %arg2: memref<1x64x256xf32, #tpu.memory_space<vmem>>, %arg3: memref<1x64x56xf32, #tpu.memory_space<vmem>>, %arg4: memref<56x256xf32, #tpu.memory_space<vmem>>, %arg5: memref<1x128x256xf32, #tpu.memory_space<vmem>>) attributes {dimension_semantics = [#tpu.dimension_semantics<parallel>, #tpu.dimension_semantics<parallel>], iteration_bounds = array<i64: 2, 1>, scalar_prefetch = 0 : i64, scratch_operands = 0 : i64, tpu.core_type = #tpu.core_type<tc>, window_params = [{transform_indices = @transform_0, window_bounds = array<i64: 1, 64, 256>}, {transform_indices = @transform_1, window_bounds = array<i64: 1, 64, 56>}, {pipeline_mode = #tpu.pipeline_mode<synchronous>, transform_indices = @transform_2, window_bounds = array<i64: 56, 256>}, {transform_indices = @transform_3, window_bounds = array<i64: 1, 128, 256>}]} {
    %c0 = arith.constant 0 : index
    %c0_0 = arith.constant 0 : index
    %c0_1 = arith.constant 0 : index
    %0 = vector.load %arg2[%c0, %c0_0, %c0_1] : memref<1x64x256xf32, #tpu.memory_space<vmem>>, vector<1x64x256xf32>
    %1 = vector.shape_cast %0 : vector<1x64x256xf32> to vector<64x256xf32>
    %c0_2 = arith.constant 0 : index
    %c0_3 = arith.constant 0 : index
    %c0_4 = arith.constant 0 : index
    %2 = vector.load %arg5[%c0_2, %c0_3, %c0_4] : memref<1x128x256xf32, #tpu.memory_space<vmem>>, vector<1x64x256xf32>
    %3 = vector.shape_cast %2 : vector<1x64x256xf32> to vector<64x256xf32>
    %4 = vector.shape_cast %1 : vector<64x256xf32> to vector<1x64x256xf32>
    tpu.vector_store %arg5[%c0_2, %c0_3, %c0_4], %4 {strides = array<i32>} : memref<1x128x256xf32, #tpu.memory_space<vmem>>, vector<1x64x256xf32>,
    %c256_i32 = arith.constant 256 : i32
    %5 = arith.muli %arg1, %c256_i32 : i32
    %6 = tpu.assume_multiple %5, 128 : i32
    %c0_5 = arith.constant 0 : index
    %7 = arith.index_cast %6 : i32 to index
    %8 = vector.load %arg4[%c0_5, %7] : memref<56x256xf32, #tpu.memory_space<vmem>>, vector<56x256xf32>
    %c0_6 = arith.constant 0 : index
    %c0_7 = arith.constant 0 : index
    %c0_8 = arith.constant 0 : index
    %9 = vector.load %arg3[%c0_6, %c0_7, %c0_8] : memref<1x64x56xf32, #tpu.memory_space<vmem>>, vector<1x64x56xf32>
    %10 = vector.shape_cast %9 : vector<1x64x56xf32> to vector<64x56xf32>
    %cst = arith.constant dense<0.000000e+00> : vector<64x256xf32>
    %11 = tpu.matmul %10, %8, %cst {dimension_numbers = #tpu.dot_dimension_numbers<[1], [0], [0], [1], [0, 0, 1, 1], [], []>} : vector<64x56xf32>, vector<56x256xf32>, vector<64x256xf32> -> vector<64x256xf32>
    %c0_9 = arith.constant 0 : index
    %c64 = arith.constant 64 : index
    %c0_10 = arith.constant 0 : index
    %12 = vector.load %arg5[%c0_9, %c64, %c0_10] : memref<1x128x256xf32, #tpu.memory_space<vmem>>, vector<1x64x256xf32>
    %13 = vector.shape_cast %12 : vector<1x64x256xf32> to vector<64x256xf32>
    %14 = vector.shape_cast %11 : vector<64x256xf32> to vector<1x64x256xf32>
    tpu.vector_store %arg5[%c0_9, %c64, %c0_10], %14 {strides = array<i32>} : memref<1x128x256xf32, #tpu.memory_space<vmem>>, vector<1x64x256xf32>,
    return
  }
  func.func @transform_0(%arg0: i32, %arg1: i32) -> (i32, i32, i32) {
    %c0_i32 = arith.constant 0 : i32
    %c0_i32_0 = arith.constant 0 : i32
    return %arg0, %c0_i32, %arg1 : i32, i32, i32
  }
  func.func @transform_1(%arg0: i32, %arg1: i32) -> (i32, i32, i32) {
    %c0_i32 = arith.constant 0 : i32
    %c0_i32_0 = arith.constant 0 : i32
    %c0_i32_1 = arith.constant 0 : i32
    return %arg0, %c0_i32, %c0_i32_0 : i32, i32, i32
  }
  func.func @transform_2(%arg0: i32, %arg1: i32) -> (i32, i32) {
    %c0_i32 = arith.constant 0 : i32
    %c0_i32_0 = arith.constant 0 : i32
    %c0_i32_1 = arith.constant 0 : i32
    return %c0_i32, %c0_i32_0 : i32, i32
  }
  func.func @transform_3(%arg0: i32, %arg1: i32) -> (i32, i32, i32) {
    %c0_i32 = arith.constant 0 : i32
    %c0_i32_0 = arith.constant 0 : i32
    return %arg0, %c0_i32, %arg1 : i32, i32, i32
  }
}

</mosaic_0001>

<bundles_post_ra>
// kernel: tpu_custom_call.1
= control target key start
LH: loop header
LB: loop body
LE: loop exit
PB: predicated region body
PF: predicated region fallthrough
CT: control target
= control target key end

     0   :  { %8 = vsyncpa [#allocation3], 0  ;;  %s1101_s0 = inlined_call_operand.hbm [shape: f32[2,64,256], index: 0, kind: input, shape index: {}]   ;;  %s1102_s1 = inlined_call_operand.vmem [shape: f32[2,64,56], index: 1, kind: input, shape index: {}]   ;;  %s1103_s2 = inlined_call_operand.vmem [shape: f32[56,256], index: 2, kind: input, shape index: {}]   ;;  %s1104_s3 = inlined_call_operand.hbm [shape: f32[2,128,256], index: 3, kind: output, shape index: {}]  }
   0x1   :  { %10 = vsyncpa [#allocation3 + $0x1], 0 }
   0x2   :  { %11 = vsyncpa [#allocation4], 0 }
   0x3   :  { %13 = vsyncpa [#allocation4 + $0x1], 0  ;;  %s815_s12 = smov 0   ;;  %s817_s13 = smov 0  }
   0x4   :  { %s819_s14 = smov 0   ;;  %s821_s15 = smov 0  }
   0x5   :  { %s823_s16 = smov 0   ;;  %s825_s17 = smov 0  }
   0x6 LB: > { %s559_s18 = sadd.s32 4294967295, %s786_s17   ;;  %s560_s19 = sadd.s32 4294967294, %s786_s17   ;;  %s786_s17 = sphi %s825_s17, %s19_s17   ;;  %s782_s16 = sphi %s823_s16, %s1119_s16   ;;  %s778_s15 = sphi %s821_s15, %s1118_s15   ;;  %s774_s14 = sphi %s819_s14, %s1117_s14   ;;  %s770_s13 = sphi %s817_s13, %s1116_s13   ;;  %s766_s12 = sphi %s815_s12, %s1115_s12  }
   0x7   : > { %s31_s20 = sadd.s32 1, %s782_s16  ;;  %s40_s21 = sadd.s32 1, %s774_s14 }
   0x8   : > { %p33_p0 = scmp.ge.s32.totalorder %s31_s20, 2  ;;  %p47_p1 = scmp.ne.s32.totalorder %s774_s14, %s770_s13 }
   0x9   : > { %p48_p2 = scmp.eq.s32.totalorder %s786_s17, 0  ;;  %p53_p3 = scmp.ne.s32.totalorder %s770_s13, %s766_s12 }
   0xa   : > { %s1121_s20 = smov (%p33_p0, %s31_s20), 0  ;;  %p54_p5 = scmp.eq.s32.totalorder %s559_s18, 0 }
   0xb   : > { %p856_p4 = por %p48_p2, %p47_p1  ;;  %s35_s23 = ssub.s32 %s782_s16, %s1121_s20 }
   0xc   : > { %p126_p6 = scmp.eq.s32.totalorder %s559_s18, 1  ;;  %p38_p7 = scmp.eq.s32.totalorder %s35_s23, 0 }
   0xd   : > { %p862_p8 = por %p54_p5, %p53_p3  ;;  %p132_p10 = scmp.eq.s32.totalorder %s560_s19, 1 }
   0xe   : > { %p866_p9 = por %p126_p6, %p47_p1  ;;  %p619_p13 = scmp.lt.s32.totalorder %s786_s17, 2 }
   0xf   : > { %s871_s26 = scalar_select %p38_p7, %s774_s14, %s40_s21  }
  0x10   : > { %s1108_s25 = scalar_select %p866_p9, 1, 0 }
  0x11   : > { %p873_p11 = por %p132_p10, %p53_p3  ;;  %s155_s28 = sand.u32 1, %s774_s14  }
  0x12   : > { %s563_s29 = sshll.u32 %s155_s28, 7  ;;  %s584_s30 = sshll.u32 %s782_s16, 11 }
  0x13   : > { %s1109_s27 = scalar_select %p873_p11, 1, 0 }
  0x14   : > { %s884_s6 = scalar_lea.hbm %s1101_s0, %s584_s30  ;;  %s159_s7 = scalar_lea.vmem [#allocation2], %s563_s29 }
  0x15   : > { %s168_s8 = sshll.u32 %s159_s7, 4  ;;  %p890_p0 = pnand %p619_p13, %p856_p4  ;;  %s886_s8 = int_to_ptr.vmem [resolvable:$true] %s168_s8 }
  0x16   : > { %s895_s10 = scalar_lea.sflag [#allocation3], %s155_s28  ;;  %s674_s11 = scalar_lea.hbm %s884_s6, 2048 }
  0x17   : > { %p675_p2 = scmp.ne.s32.totalorder %s884_s6, %s674_s11  ;;  %p676_p3 = pneg %p890_p0 }
  0x18   : > { %s679_s21 = scalar_lea.hbm %s1101_s0, 4096  ;;  %p680_p4 = scmp.lt.u32.totalorder %s884_s6, %s1101_s0 }
  0x19   : > { %p677_p5 = pnand %p676_p3, %p675_p2  ;;  %p681_p7 = scmp.lt.u32.totalorder %s679_s21, %s674_s11 }
  0x1a   : > { %p683_p13 = scmp.lt.u32.totalorder %s674_s11, %s884_s6 }
  0x1b   : > { %p678_p6 = pneg %p677_p5  ;;  %p682_p10 = por %p681_p7, %p680_p4 }
  0x1d   : > { %p684_p12 = por %p683_p13, %p682_p10 }
  0x1f   : > { %p685_p1 = pnand %p684_p12, %p678_p6 }
  0x21   : > { %688 = shalt.err (!%p685_p1)
}
  0x22   : > { %s689_s28 = scalar_lea.vmem %s886_s8, 2048  ;;  %s788_s29 = smov [#allocation2]  }
  0x23   : > { %p690_p2 = scmp.ne.s32.totalorder %s886_s8, %s689_s28  ;;  %s694_s30 = sshll.u32 %s788_s29, 4  ;;  %s695_s30 = int_to_ptr.vmem [resolvable:$false] %s694_s30 }
  0x24   : > { %s696_s4 = scalar_lea.vmem %s695_s30, 4096  ;;  %p697_p9 = scmp.lt.s32.totalorder %s886_s8, %s695_s30 }
  0x25   : > { %p692_p5 = pnand %p690_p2, %p676_p3  ;;  %p698_p4 = scmp.lt.s32.totalorder %s696_s4, %s689_s28 }
  0x27   : > { %p693_p11 = pneg %p692_p5  ;;  %p699_p7 = por %p698_p4, %p697_p9 }
  0x29   : > { %p700_p10 = pnand %p699_p7, %p693_p11 }
  0x2b   : > { %703 = shalt.err (!%p700_p10)
}
  0x2c   : > { %s789_s5 = smov 256   ;;  %s790_s7 = smov 16  }
  0x2d   : > { %614 = dma.hbm_to_vmem [thread:$0]  (!%p890_p0), %s884_s6, 2048, %s886_s8, %s895_s10, %s789_s5, %s789_s5, %s790_s7  }
  0x2e   : > { %p184_p12 = scmp.lt.s32.totalorder %s786_s17, 3  ;;  %p1111_p1 = scmp.ge.s32.totalorder %s786_s17, 1 }
  0x30   : > { %p185_p3 = pnand %p1111_p1, %p184_p12 }
  0x31   : > { %s927_s11 = sand.u32 (!%p185_p3), 1, %s770_s13  }
  0x32   : > { %188 = sbr.rel (%p185_p3) target bundleno = 315 (0x13b), region = 32  ;;  %s567_s18 = sshll.u32 (!%p185_p3), %s927_s11, 7 }
  0x33   : > { %s191_s19 = scalar_lea.sflag (!%p185_p3), [#allocation3], %s927_s11  ;;  %s931_s21 = scalar_lea.vmem (!%p185_p3), [#allocation2], %s567_s18 }
  0x39   : > { %757 = dma.done.wait (%p862_p8), %s191_s19, 2048  }
  0x3a   : > { %759 = vsyncadd (%p862_p8), %s191_s19, 4294965248  ;;  %v791_v0 = vmov 0.0   ;;  %v267_v1 = vld [vmem:[%s1103_s2 + $0x8] sm:$0xff]  ;;  %v269_v2 = vld [vmem:[%s1103_s2 + $0x18] sm:$0xff]  ;;  %p223_p9 = scmp.lt.s32.totalorder %s778_s15, 1  ;;  %vm288_vm0 = vcmask 457728  }
  0x3b   : > { %377 = vmatprep.mubr.f32.mxu0 %v791_v0  ;;  %401 = vmatprep.mubr.f32.mxu1 %v791_v0  ;;  %v266_v3 = vld [vmem:[%s1103_s2] sm:$0xff]  ;;  %v587_v4 = vpack.c.bf16 %v269_v2, %v267_v1  ;;  %v268_v5 = vld [vmem:[%s1103_s2 + $0x10] sm:$0xff]  ;;  %v271_v6 = vld [vmem:[%s1103_s2 + $0x28] sm:$0xff]  ;;  %s568_s10 = sshll.u32 %s927_s11, 8  ;;  %p1112_p11 = scmp.ne.s32.totalorder %s1108_s25, 0 }
  0x3c   : > { %v273_v7 = vld [vmem:[%s1103_s2 + $0x38] sm:$0xff]  ;;  %v589_v8 = vpack.c.bf16 %v268_v5, %v266_v3  ;;  %v270_v10 = vld [vmem:[%s1103_s2 + $0x20] sm:$0xff]  ;;  %v272_v11 = vld [vmem:[%s1103_s2 + $0x30] sm:$0xff]  ;;  %s224_s23 = scalar_select %p223_p9, %s778_s15, 1 }
  0x3d   : > { %v591_v9 = vpack.c.bf16 %v273_v7, %v271_v6  ;;  %v275_v12 = vld [vmem:[%s1103_s2 + $0x48] sm:$0xff]  ;;  %588 = vmatprep.subr.bf16.mxu0 %v587_v4  ;;  %599 = vmatprep.subr.bf16.mxu1 %v587_v4  ;;  %v277_v13 = vld [vmem:[%s1103_s2 + $0x58] sm:$0xff]  ;;  %v593_v14 = vpack.c.bf16 %v272_v11, %v270_v10  ;;  %v274_v16 = vld [vmem:[%s1103_s2 + $0x40] sm:$0xff]  ;;  %s1001_s22 = scalar_lea.vmem [#allocation5], %s568_s10 }
  0x3e   : > { %590 = vmatpush1.bf16.msra.mxu0 %v589_v8  ;;  %603 = vmatpush1.bf16.msra.mxu1 %v589_v8  ;;  %v595_v15 = vpack.c.bf16 %v277_v13, %v275_v12  ;;  %v276_v17 = vld [vmem:[%s1103_s2 + $0x50] sm:$0xff]  ;;  %s585_s4 = sshll.u32 %s224_s23, 6  ;;  %v279_v19 = vld [vmem:[%s1103_s2 + $0x68] sm:$0xff]  ;;  %v278_v20 = vld [vmem:[%s1103_s2 + $0x60] sm:$0xff]  ;;  %s458_s23 = sshll.u32 %s1001_s22, 4  ;;  %s1048_s23 = int_to_ptr.vmem [resolvable:$true] %s458_s23 }
  0x3f   : > { %592 = vmatprep.subr.bf16.mxu0 %v591_v9  ;;  %600 = vmatprep.subr.bf16.mxu1 %v591_v9  ;;  %v597_v18 = vpack.c.bf16 %v276_v17, %v274_v16  ;;  %s227_s6 = scalar_lea.vmem %s1102_s1, %s585_s4  ;;  %v229_v29 = vld [vmem:[%s931_s21] sm:$0xff]  ;;  %v230_v30 = vld [vmem:[%s931_s21 + $0x8] sm:$0xff]  ;;  %v231_v31 = vld [vmem:[%s931_s21 + $0x10] sm:$0xff]  ;;  %s704_s30 = scalar_lea.vmem %s1048_s23, 4096 }
  0x40   : > { %v280_v21 = vld [vmem:[%s227_s6] sm:$0xff]  ;;  %v281_v23 = vld [vmem:[%s227_s6 + $0x8] sm:$0xff]  ;;  %v282_v25 = vld [vmem:[%s227_s6 + $0x10] sm:$0xff]  ;;  %245 = vst [vmem:[%s1001_s22] sm:$0xff] %v229_v29  ;;  %p705_p8 = scmp.ne.s32.totalorder %s1048_s23, %s704_s30  ;;  %s792_s4 = smov [#allocation5]  }
  0x41   : > { %v284_v22 = vld [vmem:[%s227_s6 + $0x20] sm:$0xff]  ;;  %v285_v24 = vld [vmem:[%s227_s6 + $0x28] sm:$0xff]  ;;  %v286_v26 = vld [vmem:[%s227_s6 + $0x30] sm:$0xff]  ;;  %246 = vst [vmem:[%s1001_s22 + $0x8] sm:$0xff] %v230_v30  ;;  %s708_s5 = sshll.u32 %s792_s4, 4  ;;  %s709_s5 = int_to_ptr.vmem [resolvable:$false] %s708_s5 }
  0x42   : > { %594 = vmatpush1.bf16.msra.mxu0 %v593_v14  ;;  %604 = vmatpush1.bf16.msra.mxu1 %v593_v14  ;;  %v283_v27 = vld [vmem:[%s227_s6 + $0x18] sm:$0xff]  ;;  %v233_v33 = vld [vmem:[%s931_s21 + $0x20] sm:$0xff]  ;;  %v234_v34 = vld [vmem:[%s931_s21 + $0x28] sm:$0xff]  ;;  %247 = vst [vmem:[%s1001_s22 + $0x10] sm:$0xff] %v231_v31  ;;  %p706_p0 = pnand %p705_p8, %p1112_p11  ;;  %s710_s7 = scalar_lea.vmem %s709_s5, 8192 }
  0x43   : > { %596 = vmatprep.subr.bf16.mxu0 %v595_v15  ;;  %601 = vmatprep.subr.bf16.mxu1 %v595_v15  ;;  %v287_v28 = vld [vmem:[%s227_s6 + $0x38] sm:$0xff]  ;;  %v235_v35 = vld [vmem:[%s931_s21 + $0x30] sm:$0xff]  ;;  %v237_v37 = vld [vmem:[%s931_s21 + $0x40] sm:$0xff]  ;;  %249 = vst [vmem:[%s1001_s22 + $0x20] sm:$0xff] %v233_v33  ;;  %p711_p13 = scmp.lt.s32.totalorder %s1048_s23, %s709_s5  ;;  %p712_p2 = scmp.lt.s32.totalorder %s710_s7, %s704_s30 }
  0x44   : > { %v232_v32 = vld [vmem:[%s931_s21 + $0x18] sm:$0xff]  ;;  %250 = vst [vmem:[%s1001_s22 + $0x28] sm:$0xff] %v234_v34  ;;  %v238_v38 = vld [vmem:[%s931_s21 + $0x48] sm:$0xff]  ;;  %v239_v39 = vld [vmem:[%s931_s21 + $0x50] sm:$0xff]  ;;  %p707_p6 = pneg %p706_p0 }
  0x45   : > { %v236_v36 = vld [vmem:[%s931_s21 + $0x38] sm:$0xff]  ;;  %248 = vst [vmem:[%s1001_s22 + $0x18] sm:$0xff] %v232_v32  ;;  %251 = vst [vmem:[%s1001_s22 + $0x30] sm:$0xff] %v235_v35  ;;  %v241_v41 = vld [vmem:[%s931_s21 + $0x60] sm:$0xff]  ;;  %p713_p5 = por %p712_p2, %p711_p13 }
  0x46   : > { %598 = vmatpush1.bf16.msra.mxu0 %v597_v18  ;;  %605 = vmatpush1.bf16.msra.mxu1 %v597_v18  ;;  %v240_v40 = vld [vmem:[%s931_s21 + $0x58] sm:$0xff]  ;;  %252 = vst [vmem:[%s1001_s22 + $0x38] sm:$0xff] %v236_v36  ;;  %253 = vst [vmem:[%s1001_s22 + $0x40] sm:$0xff] %v237_v37  ;;  %v242_v42 = vld [vmem:[%s931_s21 + $0x68] sm:$0xff] }
  0x47   : > { %325 = vmatprep.subr.mxu0 %v279_v19  ;;  %602 = vmatprep.subr.mxu1 %v279_v19  ;;  %v243_v43 = vld [vmem:[%s931_s21 + $0x70] sm:$0xff]  ;;  %254 = vst [vmem:[%s1001_s22 + $0x48] sm:$0xff] %v238_v38  ;;  %255 = vst [vmem:[%s1001_s22 + $0x50] sm:$0xff] %v239_v39  ;;  %v244_v44 = vld [vmem:[%s931_s21 + $0x78] sm:$0xff]  ;;  %s586_s21 = sshll.u32 %s778_s15, 12  ;;  %s443_s15 = scalar_lea.sflag [#allocation4], %s927_s11 }
  0x48   : > { %256 = vst [vmem:[%s1001_s22 + $0x58] sm:$0xff] %v240_v40  ;;  %257 = vst [vmem:[%s1001_s22 + $0x60] sm:$0xff] %v241_v41  ;;  %s1046_s29 = scalar_lea.hbm %s1104_s3, %s586_s21  ;;  %p714_p4 = pnand %p713_p5, %p707_p6 }
  0x49   : > { %258 = vst [vmem:[%s1001_s22 + $0x68] sm:$0xff] %v242_v42  ;;  %259 = vst [vmem:[%s1001_s22 + $0x70] sm:$0xff] %v243_v43 }
  0x4a   : > { %326 = vmatpush1.msra.mxu0 %v278_v20  ;;  %606 = vmatpush1.msra.mxu1 %v278_v20  ;;  %260 = vst [vmem:[%s1001_s22 + $0x78] sm:$0xff] %v244_v44 }
  0x4b   : > { %571 = vmatmul.mubr.msk.f32.vlgmr.msra.gmra.mrb[0].mxu0 %vm288_vm0, %v280_v21  ;;  %575 = vmatmul.mubr.msk.f32.vlgmr.msra.gmra.mrb[0].mxu1 %vm288_vm0, %v284_v22 }
  0x4c   : > { %383 = vmatprep.mubr.f32.mxu0 %v791_v0  ;;  %407 = vmatprep.mubr.f32.mxu1 %v791_v0 }
  0x4f   : > { %572 = vmatmul.mubr.msk.f32.gmra.mrb[2].mxu0 %vm288_vm0, %v281_v23  ;;  %576 = vmatmul.mubr.msk.f32.gmra.mrb[2].mxu1 %vm288_vm0, %v285_v24 }
  0x50   : > { %389 = vmatprep.mubr.f32.mxu0 %v791_v0  ;;  %413 = vmatprep.mubr.f32.mxu1 %v791_v0 }
  0x53   : > { %573 = vmatmul.mubr.msk.f32.gmra.mrb[4].mxu0 %vm288_vm0, %v282_v25  ;;  %577 = vmatmul.mubr.msk.f32.gmra.mrb[4].mxu1 %vm288_vm0, %v286_v26 }
  0x54   : > { %395 = vmatprep.mubr.f32.mxu0 %v791_v0  ;;  %419 = vmatprep.mubr.f32.mxu1 %v791_v0 }
  0x57   : > { %574 = vmatmul.mubr.msk.f32.gmra.mrb[6].mxu0 %vm288_vm0, %v283_v27  ;;  %578 = vmatmul.mubr.msk.f32.gmra.mrb[6].mxu1 %vm288_vm0, %v287_v28 }
 0x11e   : > { %v379_v45 = vpop.f32.mrb[0].mxu0  ;;  %v403_v46 = vpop.f32.mrb[0].mxu1 }
 0x11f   : > { %426 = vst [vmem:[%s1001_s22 + $0x80] sm:$0xff] %v379_v45  ;;  %434 = vst [vmem:[%s1001_s22 + $0xc0] sm:$0xff] %v403_v46  ;;  %v381_v47 = vpop.f32.mrb[1].mxu0  ;;  %v405_v48 = vpop.f32.mrb[1].mxu1 }
 0x120   : > { %427 = vst [vmem:[%s1001_s22 + $0x88] sm:$0xff] %v381_v47  ;;  %435 = vst [vmem:[%s1001_s22 + $0xc8] sm:$0xff] %v405_v48 }
 0x122   : > { %v385_v49 = vpop.f32.mrb[2].mxu0  ;;  %v409_v50 = vpop.f32.mrb[2].mxu1 }
 0x123   : > { %428 = vst [vmem:[%s1001_s22 + $0x90] sm:$0xff] %v385_v49  ;;  %436 = vst [vmem:[%s1001_s22 + $0xd0] sm:$0xff] %v409_v50  ;;  %v387_v51 = vpop.f32.mrb[3].mxu0  ;;  %v411_v52 = vpop.f32.mrb[3].mxu1 }
 0x124   : > { %429 = vst [vmem:[%s1001_s22 + $0x98] sm:$0xff] %v387_v51  ;;  %437 = vst [vmem:[%s1001_s22 + $0xd8] sm:$0xff] %v411_v52 }
 0x126   : > { %v391_v53 = vpop.f32.mrb[4].mxu0  ;;  %v415_v54 = vpop.f32.mrb[4].mxu1 }
 0x127   : > { %430 = vst [vmem:[%s1001_s22 + $0xa0] sm:$0xff] %v391_v53  ;;  %438 = vst [vmem:[%s1001_s22 + $0xe0] sm:$0xff] %v415_v54  ;;  %v393_v55 = vpop.f32.mrb[5].mxu0  ;;  %v417_v56 = vpop.f32.mrb[5].mxu1 }
 0x128   : > { %431 = vst [vmem:[%s1001_s22 + $0xa8] sm:$0xff] %v393_v55  ;;  %439 = vst [vmem:[%s1001_s22 + $0xe8] sm:$0xff] %v417_v56 }
 0x12a   : > { %v397_v57 = vpop.f32.mrb[6].mxu0  ;;  %v421_v58 = vpop.f32.mrb[6].mxu1 }
 0x12b   : > { %432 = vst [vmem:[%s1001_s22 + $0xb0] sm:$0xff] %v397_v57  ;;  %440 = vst [vmem:[%s1001_s22 + $0xf0] sm:$0xff] %v421_v58  ;;  %v399_v59 = vpop.f32.mrb[7].mxu0  ;;  %v423_v60 = vpop.f32.mrb[7].mxu1 }
 0x12c   : > { %433 = vst [vmem:[%s1001_s22 + $0xb8] sm:$0xff] %v399_v59  ;;  %441 = vst [vmem:[%s1001_s22 + $0xf8] sm:$0xff] %v423_v60 }
 0x12d   : > { %717 = shalt.err (!%p714_p4)
}
 0x12e   : > { %s718_s18 = scalar_lea.hbm %s1046_s29, 4096  ;;  %s722_s8 = scalar_lea.hbm %s1104_s3, 8192 }
 0x12f   : > { %p719_p7 = scmp.ne.s32.totalorder %s1046_s29, %s718_s18  ;;  %p723_p1 = scmp.lt.u32.totalorder %s1046_s29, %s1104_s3 }
 0x130   : > { %p724_p3 = scmp.lt.u32.totalorder %s722_s8, %s718_s18  ;;  %p726_p8 = scmp.lt.u32.totalorder %s718_s18, %s1046_s29 }
 0x131   : > { %p720_p10 = pnand %p719_p7, %p1112_p11 }
 0x132   : > { %p725_p9 = por %p724_p3, %p723_p1 }
 0x133   : > { %p721_p12 = pneg %p720_p10 }
 0x134   : > { %p727_p0 = por %p726_p8, %p725_p9 }
 0x136   : > { %p728_p6 = pnand %p727_p0, %p721_p12 }
 0x138   : > { %731 = shalt.err (!%p728_p6)
}
 0x139   : > { %s793_s22 = smov 256   ;;  %s794_s21 = smov 16  }
 0x13a   : > { %609 = dma.vmem_to_hbm [thread:$0]  (%p1112_p11), %s1048_s23, 4096, %s1046_s29, %s443_s15, %s793_s22, %s793_s22, %s794_s21  }
 0x13b PF: > { %s473_s24 = sand.u32 1, %s766_s12   ;;  %p1113_p13 = scmp.ne.s32.totalorder %s1109_s27, 0 }
 0x13c   : > { %p1114_p2 = scmp.ge.s32.totalorder %s786_s17, 2  ;;  %s474_s28 = scalar_lea.sflag [#allocation4], %s473_s24 }
 0x13e   : > { %p616_p5 = pnand %p1114_p2, %p1113_p13 }
 0x140   : > { %761 = dma.done.wait (!%p616_p5), %s474_s28, 4096  }
 0x141   : > { %763 = vsyncadd (!%p616_p5), %s474_s28, 4294963200  ;;  %s19_s17 = sadd.s32 1, %s786_s17   ;;  %s1115_s12 = smov %s770_s13 }
 0x142   : > { %p16_p4 = scmp.ge.s32.totalorder %s19_s17, 4   ;;  %s1116_s13 = smov %s774_s14 }
 0x143   : > { %s1117_s14 = smov %s871_s26  ;;  %s1118_s15 = smov %s782_s16 }
 0x144   : > { %s1119_s16 = smov %s1121_s20  ;;  %18 = sbr.rel (!%p16_p4) target bundleno = 6 (0x6), region = 81 }
 0x14b   :  { %479 = vsyncpa [#allocation3], 1 }
 0x14c   :  { %481 = vsyncpa [#allocation3 + $0x1], 1 }
 0x14d   :  { %482 = vsyncpa [#allocation4], 1 }
 0x14e   :  { %484 = vsyncpa [#allocation4 + $0x1], 1 }

</bundles_post_ra>
